<compile_context>
chip_gen: v7x
topology: tpu7x:2x2x1
jax: 0.10.0
libtpu: 0.0.40
codegen_flags: <defaults>
</compile_context>

<pallas_src>
import functools

import jax
import jax.numpy as jnp
from jax.experimental import pallas as pl
from jax.experimental.pallas import tpu as pltpu


# ----------------------------------------------------------------------------
# Kernel: fused 3-layer MLP on a (features, TB) batch tile.
# ----------------------------------------------------------------------------
def _mlp_kernel(x_ref, w1_ref, b1_ref, w2_ref, b2_ref, w3_ref, b3_ref, o_ref,
                *, clipping, clip_lo, clip_hi, mxu_dtype):
    """x_ref: (in_dim, TB); wI_ref: (out_i, in_i); bI_ref: (out_i, 1).

    Batch is on the lane (last) axis everywhere -> lane-dense loads/stores.
    """
    def mm(w_ref, a):
        w = w_ref[...]
        if mxu_dtype is not None:
            # bf16 MXU inputs (v6e/v7x win); accumulate in f32.
            w = w.astype(mxu_dtype)
            a = a.astype(mxu_dtype)
        return jnp.dot(w, a, preferred_element_type=jnp.float32)

    x = x_ref[...]

    # hidden layer 1: Linear + ReLU   (bias/ReLU stay f32 -> safe on v5e VPU)
    h1 = jnp.maximum(mm(w1_ref, x) + b1_ref[...], 0.0)
    # hidden layer 2: Linear + ReLU
    h2 = jnp.maximum(mm(w2_ref, h1) + b2_ref[...], 0.0)
    # output layer: Linear + Identity (limit already folded into w3/b3 when
    # clipping=False, so no extra multiply here)
    y = mm(w3_ref, h2) + b3_ref[...]

    if clipping:
        y = jnp.clip(y, clip_lo, clip_hi)

    o_ref[...] = y.astype(o_ref.dtype)


def _round_up(a, m):
    return (a + m - 1) // m * m


# ----------------------------------------------------------------------------
# Wrapper
# ----------------------------------------------------------------------------
def network_forward(x, params, limit, *, clipping=False, tb=512, mxu_dtype=None):
    """Run the fused MLP Pallas kernel.

    x       : (B, in_dim) or (B, in_dim, 1) float32
    params  : (w1, b1, w2, b2, w3, b3); wI is (out_i, in_i) [PyTorch nn.Linear
              layout], bI is (out_i,)
    limit   : if clipping=False, per-output-dim float vector (shape (out_dim,));
              if clipping=True, a scalar clamped to +/- int(limit)
    tb      : max batch-tile width (lanes).  Re-derive smaller on v7x if you
              push it very high (64 MiB VMEM / TC; BlockSpec double-buffers
              each tiled operand).
    mxu_dtype: e.g. jnp.bfloat16 to feed the MXU bf16 inputs (v6e/v7x).
    """
    # Glue: reproduce `if len(x.size()) >= 3: x = x.squeeze(-1)`
    if x.ndim >= 3:
        x = jnp.squeeze(x, axis=-1)
    x = x.astype(jnp.float32)

    w1, b1, w2, b2, w3, b3 = params
    B, in_dim = x.shape
    h1_dim = w1.shape[0]
    h2_dim = w2.shape[0]
    out_dim = w3.shape[0]

    # Biases as (out, 1) so they broadcast along the lane (batch) axis.
    b1c = b1.reshape(h1_dim, 1).astype(jnp.float32)
    b2c = b2.reshape(h2_dim, 1).astype(jnp.float32)
    b3c = b3.reshape(out_dim, 1).astype(jnp.float32)

    if clipping:
        lim = int(limit)  # torch.clamp(out, -int(limit), int(limit))
        clip_lo, clip_hi = float(-lim), float(lim)
        w3_eff, b3_eff = w3.astype(jnp.float32), b3c
    else:
        # Fold the limit multiplier into the last layer: no extra operand / mul.
        lim_vec = jnp.asarray(limit, jnp.float32).reshape(out_dim, 1)
        w3_eff = w3.astype(jnp.float32) * lim_vec
        b3_eff = b3c * lim_vec
        clip_lo = clip_hi = 0.0  # unused

    # ---- transpose so batch maps to lanes, pad batch to the tile size ----
    xt = x.T  # (in_dim, B)
    tb_eff = min(int(tb), _round_up(B, 128))
    tb_eff = _round_up(tb_eff, 128)
    b_pad = _round_up(B, tb_eff)
    if b_pad != B:
        xt = jnp.pad(xt, ((0, 0), (0, b_pad - B)))
    n_tiles = b_pad // tb_eff

    kernel = functools.partial(
        _mlp_kernel, clipping=clipping, clip_lo=clip_lo, clip_hi=clip_hi,
        mxu_dtype=mxu_dtype)

    w1f = w1.astype(jnp.float32)
    w2f = w2.astype(jnp.float32)

    def resident(arr):
        # Same block index every step -> stays VMEM-resident (no re-DMA).
        return pl.BlockSpec(arr.shape, lambda i: (0,) * arr.ndim)

    in_specs = [
        pl.BlockSpec((in_dim, tb_eff), lambda i: (0, i)),   # x tile (batch-tiled)
        resident(w1f), resident(b1c),
        resident(w2f), resident(b2c),
        resident(w3_eff), resident(b3_eff),
    ]
    out_spec = pl.BlockSpec((out_dim, tb_eff), lambda i: (0, i))

    flops = 2 * b_pad * (in_dim * h1_dim + h1_dim * h2_dim + h2_dim * out_dim)
    param_bytes = 4 * (w1f.size + b1c.size + w2f.size + b2c.size
                       + w3_eff.size + b3_eff.size)
    bytes_accessed = 4 * b_pad * (in_dim + out_dim) + param_bytes
    cost = pl.CostEstimate(flops=flops, transcendentals=0,
                           bytes_accessed=bytes_accessed)

    out_t = pl.pallas_call(
        kernel,
        grid=(n_tiles,),
        in_specs=in_specs,
        out_specs=out_spec,
        out_shape=jax.ShapeDtypeStruct((out_dim, b_pad), jnp.float32),
        compiler_params=pltpu.CompilerParams(
            dimension_semantics=("parallel",)),   # megacore / v7x 2-TC sharding
        cost_estimate=cost,
    )(xt, w1f, b1c, w2f, b2c, w3_eff, b3_eff)

    # back to (B, out_dim), dropping batch padding
    return out_t[:, :B].T


# ----------------------------------------------------------------------------
# Deterministic parameter init (synthetic - mirrors nn.Linear shapes/layout)
# ----------------------------------------------------------------------------
def init_params(key, sizes):
    """sizes = [in, h1, h2, out]; returns (w1,b1,w2,b2,w3,b3), wI:(out,in), bI:(out,)."""
    params = []
    for j in range(len(sizes) - 1):
        key, kw, kb = jax.random.split(key, 3)
        fan_in, fan_out = sizes[j], sizes[j + 1]
        bound = 1.0 / jnp.sqrt(fan_in)
        w = jax.random.uniform(kw, (fan_out, fan_in), jnp.float32, -bound, bound)
        b = jax.random.uniform(kb, (fan_out,), jnp.float32, -bound, bound)
        params += [w, b]
    return tuple(params)


# ----------------------------------------------------------------------------
# Reference (pure JAX, f32) for sanity check
# ----------------------------------------------------------------------------
def reference_forward(x, params, limit, *, clipping=False):
    if x.ndim >= 3:
        x = jnp.squeeze(x, axis=-1)
    w1, b1, w2, b2, w3, b3 = params
    h = jnp.maximum(x @ w1.T + b1, 0.0)
    h = jnp.maximum(h @ w2.T + b2, 0.0)
    y = h @ w3.T + b3
    if clipping:
        lim = int(limit)
        return jnp.clip(y, -float(lim), float(lim))
    return y * jnp.asarray(limit, jnp.float32)[None, :]


# ----------------------------------------------------------------------------
if __name__ == "__main__":
    # sizes = [obs_dim, hidden, hidden, act_dim]
    sizes = [16, 32, 32, 4]
    batch = 256  # exercises the batch grid (2 steps at tb=128)

    key = jax.random.PRNGKey(0)
    key, kx = jax.random.split(key)

    # Input is (B, in_dim, 1) to exercise the squeeze(-1) path.
    x = jax.random.normal(kx, (batch, sizes[0], 1), jnp.float32)
    params = init_params(key, sizes)

    # TODO(synk): `torch.FloatTensor(self.limit)` with an int limit allocates an
    # uninitialized tensor in PyTorch; we model the sane usage where `limit` is
    # a per-output-dim float vector multiplied elementwise.
    limit_vec = jnp.arange(1.0, sizes[-1] + 1.0, dtype=jnp.float32)  # (out_dim,)

    # --- f32 path, non-clipping (limit folded into last layer) ---
    out = jax.block_until_ready(
        network_forward(x, params, limit_vec, clipping=False, tb=128))
    ref = reference_forward(x, params, limit_vec, clipping=False)
    assert out.shape == (batch, sizes[-1])
    assert jnp.allclose(out, ref, atol=1e-5, rtol=1e-5), "mismatch vs reference (f32)"

    # --- clipping branch (clamps to +/- int(limit)) ---
    out_clip = jax.block_until_ready(
        network_forward(x, params, 1, clipping=True, tb=128))
    ref_clip = reference_forward(x, params, 1, clipping=True)
    assert jnp.allclose(out_clip, ref_clip, atol=1e-5, rtol=1e-5), "mismatch (clip)"

    # --- bf16 MXU-input path (v6e/v7x perf mode); looser tolerance ---
    out_bf16 = jax.block_until_ready(
        network_forward(x, params, limit_vec, clipping=False, tb=128,
                        mxu_dtype=jnp.bfloat16))
    assert jnp.all(jnp.isfinite(out_bf16))
    assert jnp.allclose(out_bf16, ref, atol=5e-2, rtol=5e-2), "mismatch (bf16)"

    # --- tiny-batch online-inference path (B=2, single grid step) ---
    x_small = x[:2]
    out_small = jax.block_until_ready(
        network_forward(x_small, params, limit_vec, clipping=False))
    ref_small = reference_forward(x_small, params, limit_vec, clipping=False)
    assert jnp.allclose(out_small, ref_small, atol=1e-5, rtol=1e-5), "mismatch (tiny B)"

    print("KERNEL_OK")
</pallas_src>

<mosaic_0001>
module attributes {stable_mosaic.version = 11 : i64} {
  func.func @_mlp_kernel(%arg0: i32, %arg1: memref<16x128xf32, #tpu.memory_space<vmem>>, %arg2: memref<32x16xf32, #tpu.memory_space<vmem>>, %arg3: memref<32x1xf32, #tpu.memory_space<vmem>>, %arg4: memref<32x32xf32, #tpu.memory_space<vmem>>, %arg5: memref<32x1xf32, #tpu.memory_space<vmem>>, %arg6: memref<4x32xf32, #tpu.memory_space<vmem>>, %arg7: memref<4x1xf32, #tpu.memory_space<vmem>>, %arg8: memref<4x128xf32, #tpu.memory_space<vmem>>) attributes {dimension_semantics = [#tpu.dimension_semantics<parallel>], iteration_bounds = array<i64: 2>, scalar_prefetch = 0 : i64, scratch_operands = 0 : i64, tpu.core_type = #tpu.core_type<tc>, window_params = [{transform_indices = @transform_0, window_bounds = array<i64: 16, 128>}, {pipeline_mode = #tpu.pipeline_mode<synchronous>, transform_indices = @transform_1, window_bounds = array<i64: 32, 16>}, {pipeline_mode = #tpu.pipeline_mode<synchronous>, transform_indices = @transform_2, window_bounds = array<i64: 32, 1>}, {pipeline_mode = #tpu.pipeline_mode<synchronous>, transform_indices = @transform_3, window_bounds = array<i64: 32, 32>}, {pipeline_mode = #tpu.pipeline_mode<synchronous>, transform_indices = @transform_4, window_bounds = array<i64: 32, 1>}, {pipeline_mode = #tpu.pipeline_mode<synchronous>, transform_indices = @transform_5, window_bounds = array<i64: 4, 32>}, {pipeline_mode = #tpu.pipeline_mode<synchronous>, transform_indices = @transform_6, window_bounds = array<i64: 4, 1>}, {transform_indices = @transform_7, window_bounds = array<i64: 4, 128>}]} {
    %c0 = arith.constant 0 : index
    %c0_0 = arith.constant 0 : index
    %0 = vector.load %arg1[%c0, %c0_0] : memref<16x128xf32, #tpu.memory_space<vmem>>, vector<16x128xf32>
    %c0_1 = arith.constant 0 : index
    %c0_2 = arith.constant 0 : index
    %1 = vector.load %arg2[%c0_1, %c0_2] : memref<32x16xf32, #tpu.memory_space<vmem>>, vector<32x16xf32>
    %cst = arith.constant dense<0.000000e+00> : vector<32x128xf32>
    %2 = tpu.matmul %1, %0, %cst {dimension_numbers = #tpu.dot_dimension_numbers<[1], [0], [0], [1], [0, 0, 1, 1], [], []>} : vector<32x16xf32>, vector<16x128xf32>, vector<32x128xf32> -> vector<32x128xf32>
    %c0_3 = arith.constant 0 : index
    %c0_4 = arith.constant 0 : index
    %3 = vector.load %arg3[%c0_3, %c0_4] : memref<32x1xf32, #tpu.memory_space<vmem>>, vector<32x1xf32>
    %4 = vector.broadcast %3 : vector<32x1xf32> to vector<32x128xf32>
    %5 = arith.addf %2, %4 : vector<32x128xf32>
    %cst_5 = arith.constant 0.000000e+00 : f32
    %6 = vector.broadcast %cst_5 : f32 to vector<32x128xf32>
    %7 = arith.maximumf %5, %6 : vector<32x128xf32>
    %c0_6 = arith.constant 0 : index
    %c0_7 = arith.constant 0 : index
    %8 = vector.load %arg4[%c0_6, %c0_7] : memref<32x32xf32, #tpu.memory_space<vmem>>, vector<32x32xf32>
    %cst_8 = arith.constant dense<0.000000e+00> : vector<32x128xf32>
    %9 = tpu.matmul %8, %7, %cst_8 {dimension_numbers = #tpu.dot_dimension_numbers<[1], [0], [0], [1], [0, 0, 1, 1], [], []>} : vector<32x32xf32>, vector<32x128xf32>, vector<32x128xf32> -> vector<32x128xf32>
    %c0_9 = arith.constant 0 : index
    %c0_10 = arith.constant 0 : index
    %10 = vector.load %arg5[%c0_9, %c0_10] : memref<32x1xf32, #tpu.memory_space<vmem>>, vector<32x1xf32>
    %11 = vector.broadcast %10 : vector<32x1xf32> to vector<32x128xf32>
    %12 = arith.addf %9, %11 : vector<32x128xf32>
    %cst_11 = arith.constant 0.000000e+00 : f32
    %13 = vector.broadcast %cst_11 : f32 to vector<32x128xf32>
    %14 = arith.maximumf %12, %13 : vector<32x128xf32>
    %c0_12 = arith.constant 0 : index
    %c0_13 = arith.constant 0 : index
    %15 = vector.load %arg6[%c0_12, %c0_13] : memref<4x32xf32, #tpu.memory_space<vmem>>, vector<4x32xf32>
    %cst_14 = arith.constant dense<0.000000e+00> : vector<4x128xf32>
    %16 = tpu.matmul %15, %14, %cst_14 {dimension_numbers = #tpu.dot_dimension_numbers<[1], [0], [0], [1], [0, 0, 1, 1], [], []>} : vector<4x32xf32>, vector<32x128xf32>, vector<4x128xf32> -> vector<4x128xf32>
    %c0_15 = arith.constant 0 : index
    %c0_16 = arith.constant 0 : index
    %17 = vector.load %arg7[%c0_15, %c0_16] : memref<4x1xf32, #tpu.memory_space<vmem>>, vector<4x1xf32>
    %18 = vector.broadcast %17 : vector<4x1xf32> to vector<4x128xf32>
    %19 = arith.addf %16, %18 : vector<4x128xf32>
    %c0_17 = arith.constant 0 : index
    %c0_18 = arith.constant 0 : index
    %20 = vector.load %arg8[%c0_17, %c0_18] : memref<4x128xf32, #tpu.memory_space<vmem>>, vector<4x128xf32>
    tpu.vector_store %arg8[%c0_17, %c0_18], %19 {strides = array<i32>} : memref<4x128xf32, #tpu.memory_space<vmem>>, vector<4x128xf32>,
    return
  }
  func.func @transform_0(%arg0: i32) -> (i32, i32) {
    %c0_i32 = arith.constant 0 : i32
    %c0_i32_0 = arith.constant 0 : i32
    return %c0_i32, %arg0 : i32, i32
  }
  func.func @transform_1(%arg0: i32) -> (i32, i32) {
    %c0_i32 = arith.constant 0 : i32
    %c0_i32_0 = arith.constant 0 : i32
    %c0_i32_1 = arith.constant 0 : i32
    return %c0_i32, %c0_i32_0 : i32, i32
  }
  func.func @transform_2(%arg0: i32) -> (i32, i32) {
    %c0_i32 = arith.constant 0 : i32
    %c0_i32_0 = arith.constant 0 : i32
    %c0_i32_1 = arith.constant 0 : i32
    return %c0_i32, %c0_i32_0 : i32, i32
  }
  func.func @transform_3(%arg0: i32) -> (i32, i32) {
    %c0_i32 = arith.constant 0 : i32
    %c0_i32_0 = arith.constant 0 : i32
    %c0_i32_1 = arith.constant 0 : i32
    return %c0_i32, %c0_i32_0 : i32, i32
  }
  func.func @transform_4(%arg0: i32) -> (i32, i32) {
    %c0_i32 = arith.constant 0 : i32
    %c0_i32_0 = arith.constant 0 : i32
    %c0_i32_1 = arith.constant 0 : i32
    return %c0_i32, %c0_i32_0 : i32, i32
  }
  func.func @transform_5(%arg0: i32) -> (i32, i32) {
    %c0_i32 = arith.constant 0 : i32
    %c0_i32_0 = arith.constant 0 : i32
    %c0_i32_1 = arith.constant 0 : i32
    return %c0_i32, %c0_i32_0 : i32, i32
  }
  func.func @transform_6(%arg0: i32) -> (i32, i32) {
    %c0_i32 = arith.constant 0 : i32
    %c0_i32_0 = arith.constant 0 : i32
    %c0_i32_1 = arith.constant 0 : i32
    return %c0_i32, %c0_i32_0 : i32, i32
  }
  func.func @transform_7(%arg0: i32) -> (i32, i32) {
    %c0_i32 = arith.constant 0 : i32
    %c0_i32_0 = arith.constant 0 : i32
    return %c0_i32, %arg0 : i32, i32
  }
}

</mosaic_0001>

<bundles_post_ra>
// kernel: tpu_custom_call.1
= control target key start
LH: loop header
LB: loop body
LE: loop exit
PB: predicated region body
PF: predicated region fallthrough
CT: control target
= control target key end

     0   :  { %12 = vsyncpa [#allocation4], 0  ;;  %s1157_s0 = inlined_call_operand.vmem [shape: f32[16,256], index: 0, kind: input, shape index: {}]   ;;  %s1158_s1 = inlined_call_operand.vmem [shape: f32[32,16], index: 1, kind: input, shape index: {}]   ;;  %s1159_s2 = inlined_call_operand.vmem [shape: f32[32,1], index: 2, kind: input, shape index: {}]   ;;  %s1160_s3 = inlined_call_operand.vmem [shape: f32[32,32], index: 3, kind: input, shape index: {}]   ;;  %s1161_s4 = inlined_call_operand.vmem [shape: f32[32,1], index: 4, kind: input, shape index: {}]   ;;  %s1162_s5 = inlined_call_operand.vmem [shape: f32[4,32], index: 5, kind: input, shape index: {}]   ;;  %s1163_s6 = inlined_call_operand.vmem [shape: f32[4,1], index: 6, kind: input, shape index: {}]   ;;  %s1164_s7 = inlined_call_operand.hbm [shape: f32[4,256], index: 7, kind: output, shape index: {}]  }
   0x1   :  { %14 = vsyncpa [#allocation4 + $0x1], 0  ;;  %s984_s24 = smov 0   ;;  %s986_s25 = smov 0  }
   0x2   :  { %s988_s26 = smov 0   ;;  %s990_s27 = smov 0  }
   0x3 LB: > { %s736_s28 = sadd.s32 4294967295, %s937_s27   ;;  %s737_s29 = sadd.s32 4294967294, %s937_s27   ;;  %s937_s27 = sphi %s990_s27, %s1170_s27   ;;  %s933_s26 = sphi %s988_s26, %s1169_s26   ;;  %s929_s25 = sphi %s986_s25, %s1168_s25   ;;  %s925_s24 = sphi %s984_s24, %s1167_s24  }
   0x4   : > { %s1007_s30 = sadd.s32 1, %s937_s27   ;;  %s27_s8 = sadd.s32 1, %s933_s26 }
   0x5   : > { %s24_s9 = ssub.s32 %s937_s27, %s1007_s30  ;;  %p34_p0 = scmp.ne.s32.totalorder %s933_s26, %s929_s25 }
   0x6   : > { %p25_p1 = scmp.eq.s32.totalorder %s24_s9, 0  ;;  %p35_p2 = scmp.eq.s32.totalorder %s937_s27, 0 }
   0x7   : > { %p190_p3 = scmp.eq.s32.totalorder %s736_s28, 1  ;;  %p195_p4 = scmp.ne.s32.totalorder %s929_s25, %s925_s24 }
   0x8   : > { %s1020_s10 = scalar_select %p25_p1, %s933_s26, %s27_s8  }
   0x9   : > { %p36_p5 = por %p35_p2, %p34_p0  ;;  %p1022_p6 = por %p190_p3, %p34_p0 }
   0xa   : > { %p196_p7 = scmp.eq.s32.totalorder %s737_s29, 1  ;;  %p739_p9 = scmp.ge.s32.totalorder %s937_s27, 2 }
   0xc   : > { %p1026_p8 = por %p196_p7, %p195_p4  ;;  %230 = sbr.rel (%p739_p9) target bundleno = 26 (0x1a), region = 40 }
  0x13   : > { %233 = sbr.rel (!%p36_p5) target bundleno = 26 (0x1a), region = 44  ;;  %s235_s13 = sand.u32 (%p36_p5), 1, %s933_s26  }
  0x14   : > { %s741_s14 = sshll.u32 (%p36_p5), %s937_s27, 3  ;;  %s740_s15 = sshll.u32 (%p36_p5), %s235_s13, 4 }
  0x15   : > { %s239_s18 = scalar_lea.vmem (%p36_p5), %s1157_s0, %s741_s14  ;;  %s237_s19 = scalar_lea.vmem (%p36_p5), [#allocation2], %s740_s15 }
  0x16   : > { %v269_v0 = vld [vmem:[%s239_s18] sm:$0xff] (%p36_p5)  ;;  %v271_v1 = vld [vmem:[%s239_s18 + $0x10] sm:$0xff] (%p36_p5) }
  0x17   : > { %270 = vst [vmem:[%s237_s19] sm:$0xff] (%p36_p5), %v269_v0  ;;  %272 = vst [vmem:[%s237_s19 + $0x8] sm:$0xff] (%p36_p5), %v271_v1 }
  0x1a PF: > { %p742_p10 = scmp.ge.s32.totalorder %s937_s27, 1  ;;  %p277_p11 = scmp.lt.s32.totalorder %s937_s27, 3 }
  0x1c   : > { %p278_p12 = pnand %p742_p10, %p277_p11 }
  0x1d   : > { %s1041_s20 = sand.u32 (!%p278_p12), 1, %s929_s25   ;;  %v317_v2 = vld [vmem:[%s1158_s1] sm:$0xff] (!%p278_p12)  ;;  %vm345_vm0 = vcmask (!%p278_p12), 130048   ;;  %v939_v3 = vmov (!%p278_p12), 0   ;;  %v323_v5 = vld [vmem:[%s1159_s2 + $0x10] sm:$0xff] (!%p278_p12)  ;;  %v322_v8 = vld [vmem:[%s1159_s2 + $0x8] sm:$0xff] (!%p278_p12) }
  0x1e   : > { %281 = sbr.rel (%p278_p12) target bundleno = 720 (0x2d0), region = 82  ;;  %s743_s23 = sshll.u32 (!%p278_p12), %s1041_s20, 4  ;;  %781 = vmatprep.mubr.msk.f32.mxu0 (!%p278_p12), %vm345_vm0, %v317_v2  ;;  %873 = vset.pattern.permute.xlu0 (!%p278_p12), %v939_v3  ;;  %v321_v4 = vld [vmem:[%s1159_s2] sm:$0xff] (!%p278_p12)  ;;  %v324_v10 = vld [vmem:[%s1159_s2 + $0x18] sm:$0xff] (!%p278_p12)  ;;  %v318_v11 = vld [vmem:[%s1158_s1 + $0x8] sm:$0xff] (!%p278_p12)  ;;  %vm475_vm1 = vcmask (!%p278_p12), 261120  }
  0x1f   : > { %327 = vperm.xlu0 (!%p278_p12), %873, %v321_v4   ;;  %874 = vset.pattern.permute.xlu1 (!%p278_p12), %v939_v3  ;;  %s286_s14 = scalar_lea.vmem (!%p278_p12), [#allocation2], %s743_s23  ;;  %v451_v12 = vld [vmem:[%s1161_s4] sm:$0xff] (!%p278_p12)  ;;  %v319_v13 = vld [vmem:[%s1158_s1 + $0x10] sm:$0xff] (!%p278_p12)  ;;  %v452_v14 = vld [vmem:[%s1161_s4 + $0x8] sm:$0xff] (!%p278_p12)  ;;  %v940_v41 = vmov (!%p278_p12), 0.0|0.0   ;;  %vm941_vm2 = vmmov (!%p278_p12), 0  }
  0x20   : > { %v315_v6 = vld [vmem:[%s286_s14] sm:$0xff] (!%p278_p12)  ;;  %v316_v7 = vld [vmem:[%s286_s14 + $0x8] sm:$0xff] (!%p278_p12)  ;;  %337 = vperm.xlu1 (!%p278_p12), %874, %v323_v5   ;;  %v942_v42 = vmov (!%p278_p12), 0.0   ;;  %s744_s19 = sshll.u32 (!%p278_p12), %s1041_s20, 2  ;;  %s755_s21 = sshll.u32 (!%p278_p12), %s736_s28, 6 }
  0x21   : > { %v812_v9 = vpack.c.bf16 (!%p278_p12), %v316_v7, %v315_v6  ;;  %v320_v15 = vld [vmem:[%s1158_s1 + $0x18] sm:$0xff] (!%p278_p12)  ;;  %v453_v16 = vld [vmem:[%s1161_s4 + $0x10] sm:$0xff] (!%p278_p12)  ;;  %v578_v18 = vld [vmem:[%s1163_s6] sm:$0xf] (!%p278_p12)  ;;  %s314_s22 = scalar_lea.vmem (!%p278_p12), [#allocation3], %s744_s19  ;;  %s1113_s9 = scalar_lea.hbm (!%p278_p12), %s1164_s7, %s755_s21 }
  0x22   : > { %v454_v17 = vld [vmem:[%s1161_s4 + $0x18] sm:$0xff] (!%p278_p12)  ;;  %v447_v19 = vld [vmem:[%s1160_s3] sm:$0xff] (!%p278_p12)  ;;  %v448_v38 = vld [vmem:[%s1160_s3 + $0x8] sm:$0xff] (!%p278_p12)  ;;  %s672_s23 = sshll.u32 (!%p278_p12), %s314_s22, 4  ;;  %s659_s13 = scalar_lea.sflag (!%p278_p12), [#allocation4], %s1041_s20  ;;  %s1115_s23 = int_to_ptr.vmem [resolvable:$true] %s672_s23 }
  0x23   : > { %813 = vmatprep.subr.bf16.mxu0 (!%p278_p12), %v812_v9  ;;  %332 = vperm.xlu0 (!%p278_p12), %873, %v322_v8   ;;  %v449_v39 = vld [vmem:[%s1160_s3 + $0x10] sm:$0xff] (!%p278_p12)  ;;  %v450_v40 = vld [vmem:[%s1160_s3 + $0x18] sm:$0xff] (!%p278_p12)  ;;  %v577_v61 = vld [vmem:[%s1162_s5] sm:$0xf] (!%p278_p12)  ;;  %s875_s14 = scalar_lea.vmem (!%p278_p12), %s1115_s23, 64  ;;  %s943_s28 = smov (!%p278_p12), [#allocation3]  }
  0x24   : > { %815 = vmatpush3.bf16.msra.mxu0 (!%p278_p12), %v812_v9  ;;  %342 = vperm.xlu1 (!%p278_p12), %874, %v324_v10   ;;  %p876_p13 = scmp.ne.s32.totalorder (!%p278_p12), %s1115_s23, %s875_s14  ;;  %s879_s15 = sshll.u32 (!%p278_p12), %s943_s28, 4  ;;  %s880_s15 = int_to_ptr.vmem [resolvable:$false] %s879_s15 }
  0x25   : > { %795 = vmatprep.mubr.msk.f32.mxu1 %vm475_vm1, %v447_v19  ;;  %824 = vmatprep.subr.bf16.mxu0 %v940_v41  ;;  %s881_s16 = scalar_lea.vmem %s880_s15, 128  ;;  %p882_p2 = scmp.lt.s32.totalorder %s1115_s23, %s880_s15 }
  0x26   : > { %p877_p0 = pnand %p876_p13, %p1022_p6  ;;  %p883_p3 = scmp.lt.s32.totalorder %s881_s16, %s875_s14 }
  0x27   : > { %782 = vmatmul.mubr.msk.f32.vlgmr.msra.gmra.mrb[0].mxu0 %vm345_vm0, %v318_v11  ;;  %457 = vperm.xlu0 %873, %v451_v12  }
  0x28   : > { %784 = vmatprep.mubr.msk.f32.mxu0 %vm345_vm0, %v319_v13  ;;  %462 = vperm.xlu1 %874, %v452_v14   ;;  %p878_p1 = pneg %p877_p0  ;;  %p884_p4 = por %p883_p3, %p882_p2 }
  0x2a   : > { %p885_p5 = pnand %p884_p4, %p878_p1 }
  0x2b   : > { %785 = vmatmul.mubr.msk.f32.gmra.mrb[2].mxu0 %vm345_vm0, %v320_v15  ;;  %467 = vperm.xlu0 %873, %v453_v16  }
  0x2c   : > { %472 = vperm.xlu1 %874, %v454_v17   ;;  %809 = vmatprep.mubr.msk.f32.mxu0 %vm941_vm2, %v942_v42 }
  0x2f   : > { %581 = vperm.xlu0 %873, %v578_v18  }
  0x9e   : > { %v328_v20 = vpop.permute.xlu0 %327 }
  0x9f   : > { %v338_v21 = vpop.permute.xlu1 %337 }
  0xa2   : > { %v333_v22 = vpop.permute.xlu0 %332 }
  0xa3   : > { %v343_v28 = vpop.permute.xlu1 %342 }
  0xa6   : > { %v458_v44 = vpop.permute.xlu0 %457 }
  0xa7   : > { %v463_v43 = vpop.permute.xlu1 %462 }
  0xaa   : > { %v468_v53 = vpop.permute.xlu0 %467 }
  0xab   : > { %v473_v50 = vpop.permute.xlu1 %472 }
  0xae   : > { %v582_v62 = vpop.permute.xlu0 %581 }
  0xfa   : > { %v783_v23 = vpop.f32.mrb[0].mxu0 }
  0xfb   : > { %v430_v24 = vadd.f32 %v783_v23, %v333_v22  ;;  %v424_v25 = vpop.f32.mrb[1].mxu0 }
  0xfc   : > { %v425_v26 = vadd.f32 %v424_v25, %v328_v20 }
  0xfd   : > { %v444_v27 = vmax.f32 %v430_v24, 0.0 }
  0xfe   : > { %v443_v29 = vmax.f32 %v425_v26, 0.0  ;;  %v786_v30 = vpop.f32.mrb[2].mxu0 }
  0xff   : > { %v440_v31 = vadd.f32 %v786_v30, %v343_v28  ;;  %v434_v32 = vpop.f32.mrb[3].mxu0 }
 0x100   : > { %v435_v33 = vadd.f32 %v434_v32, %v338_v21  ;;  %v816_v34 = vpack.c.bf16 %v444_v27, %v443_v29 }
 0x101   : > { %v446_v35 = vmax.f32 %v440_v31, 0.0 }
 0x102   : > { %v445_v36 = vmax.f32 %v435_v33, 0.0  ;;  %817 = vmatprep.subr.bf16.mxu1 %v816_v34 }
 0x103   : > { %819 = vmatpush3.bf16.msra.mxu1 %v816_v34 }
 0x104   : > { %v820_v37 = vpack.c.bf16 %v446_v35, %v445_v36 }
 0x106   : > { %821 = vmatprep.subr.bf16.mxu1 %v820_v37 }
 0x107   : > { %823 = vmatpush3.bf16.msra.mxu1 %v820_v37 }
 0x10a   : > { %796 = vmatmul.mubr.msk.f32.vlgmr.msra.gmra.mrb[0].mxu1 %vm475_vm1, %v448_v38 }
 0x10b   : > { %798 = vmatprep.mubr.msk.f32.mxu1 %vm475_vm1, %v449_v39 }
 0x10e   : > { %799 = vmatmul.mubr.msk.f32.gmra.mrb[2].mxu1 %vm475_vm1, %v450_v40 }
 0x1dd   : > { %v797_v45 = vpop.f32.mrb[0].mxu1 }
 0x1de   : > { %v560_v46 = vadd.f32 %v797_v45, %v463_v43  ;;  %v554_v47 = vpop.f32.mrb[1].mxu1 }
 0x1df   : > { %v555_v48 = vadd.f32 %v554_v47, %v458_v44 }
 0x1e0   : > { %v574_v49 = vmax.f32 %v560_v46, 0.0 }
 0x1e1   : > { %v573_v51 = vmax.f32 %v555_v48, 0.0  ;;  %v800_v52 = vpop.f32.mrb[2].mxu1 }
 0x1e2   : > { %v570_v54 = vadd.f32 %v800_v52, %v473_v50  ;;  %v564_v55 = vpop.f32.mrb[3].mxu1 }
 0x1e3   : > { %v825_v56 = vpack.c.bf16 %v574_v49, %v573_v51  ;;  %v565_v57 = vadd.f32 %v564_v55, %v468_v53 }
 0x1e4   : > { %v576_v58 = vmax.f32 %v570_v54, 0.0 }
 0x1e5   : > { %v575_v59 = vmax.f32 %v565_v57, 0.0  ;;  %826 = vmatpush3.bf16.msra.mxu0 %v825_v56 }
 0x1e6   : > { %827 = vmatprep.subr.bf16.mxu0 %v940_v41 }
 0x1e7   : > { %v828_v60 = vpack.c.bf16 %v576_v58, %v575_v59 }
 0x1e9   : > { %829 = vmatpush3.bf16.msra.mxu0 %v828_v60 }
 0x1ec   : > { %810 = vmatmul.mubr.msk.f32.vlgmr.msra.gmra.mrb[4].mxu0 %vm475_vm1, %v577_v61 }
 0x2bf   : > { %v653_v63 = vpop.f32.mrb[4].mxu0 }
 0x2c0   : > { %v654_v0 = vadd.f32 %v653_v63, %v582_v62  ;;  %v811_v1 = vpop.f32.mrb[5].mxu0 }
 0x2c2   : > { %657 = vst [vmem:[%s314_s22] sm:$0xf] %v654_v0 }
 0x2c3   : > { %888 = shalt.err (!%p885_p5)
}
 0x2c4   : > { %s889_s20 = scalar_lea.hbm %s1113_s9, 64  ;;  %s893_s19 = scalar_lea.hbm %s1164_s7, 128 }
 0x2c5   : > { %p890_p7 = scmp.ne.s32.totalorder %s1113_s9, %s889_s20  ;;  %p894_p12 = scmp.lt.u32.totalorder %s1113_s9, %s1164_s7 }
 0x2c6   : > { %p895_p13 = scmp.lt.u32.totalorder %s893_s19, %s889_s20  ;;  %p897_p1 = scmp.lt.u32.totalorder %s889_s20, %s1113_s9 }
 0x2c7   : > { %p891_p10 = pnand %p890_p7, %p1022_p6 }
 0x2c8   : > { %p896_p0 = por %p895_p13, %p894_p12 }
 0x2c9   : > { %p892_p11 = pneg %p891_p10 }
 0x2ca   : > { %p898_p2 = por %p897_p1, %p896_p0 }
 0x2cc   : > { %p899_p3 = pnand %p898_p2, %p892_p11 }
 0x2ce   : > { %902 = shalt.err (!%p899_p3)
}
 0x2cf   : > { %830 = dma.vmem_to_hbm [thread:$0]  (%p1022_p6), %s1115_s23, 64, %s1113_s9, %s659_s13  }
 0x2d0 PF: > { %s684_s29 = sand.u32 1, %s925_s24   ;;  %p833_p4 = pnand %p739_p9, %p1026_p8 }
 0x2d1   : > { %s685_s8 = scalar_lea.sflag [#allocation4], %s684_s29 }
 0x2d2   : > { %920 = dma.done.wait (!%p833_p4), %s685_s8, 64  }
 0x2d3   : > { %922 = vsyncadd (!%p833_p4), %s685_s8, 4294967232  ;;  %p17_p5 = scmp.ge.s32.totalorder %s1007_s30, 4   ;;  %s1167_s24 = smov %s929_s25 }
 0x2d4   : > { %s1168_s25 = smov %s933_s26  ;;  %s1169_s26 = smov %s1020_s10 }
 0x2d5   : > { %s1170_s27 = smov %s1007_s30  ;;  %19 = sbr.rel (!%p17_p5) target bundleno = 3 (0x3), region = 126 }
 0x2dc   :  { %690 = vsyncpa [#allocation4], 1 }
 0x2dd   :  { %692 = vsyncpa [#allocation4 + $0x1], 1 }

</bundles_post_ra>
